<compile_context>
chip_gen: v7x
topology: tpu7x:2x2x1
jax: 0.10.0
libtpu: 0.0.40
codegen_flags: <defaults>
</compile_context>

<pallas_src>
import functools

import jax
import jax.numpy as jnp
from jax import lax
from jax.experimental import pallas as pl
from jax.experimental.pallas import tpu as pltpu

LANE = 128


def _round_up(x, m):
    return (x + m - 1) // m * m


@functools.lru_cache(maxsize=1)
def _vmem_limit_bytes():
    """Per-generation scoped-VMEM budget (3/4 of physical, capped at 100 MiB)."""
    cap = 64 * 1024 * 1024
    try:
        info = pltpu.get_tpu_info()
        cap = int(getattr(info, "vmem_capacity_bytes", cap) or cap)
    except Exception:
        pass
    return int(min(cap * 3 // 4, 100 * 1024 * 1024))


def _choose_tiles(n):
    """Padded node count and (row tile, contraction tile) that divide it."""
    n_pad = _round_up(n, LANE)
    tm = LANE
    for cand in (512, 256):            # keep >= 2 row tiles for v7x's 2 TCs
        if n_pad % cand == 0 and n_pad // cand >= 2:
            tm = cand
            break
    tk = LANE
    for cand in (2048, 1024, 512, 256):
        if n_pad % cand == 0:
            tk = cand
            break
    return n_pad, tm, tk


def _pad2d(x, rows, cols):
    r, c = x.shape
    return jnp.pad(x, ((0, rows - r), (0, cols - c)))


# ---------------------------------------------------------------------------
# Kernels
# ---------------------------------------------------------------------------
def premul_kernel(x_ref, w_ref, h_ref, *, activate):
    """h = act(x @ W) for one row tile (layer 1 only)."""
    h = jnp.dot(x_ref[...], w_ref[...], preferred_element_type=jnp.float32)
    if activate:
        h = jnp.tanh(h)                       # elementwise stays f32
    h_ref[...] = h.astype(h_ref.dtype)


def adj_fused_kernel(adj_ref, h_ref, w_ref, out_ref, acc_ref, *, activate):
    """acc[i] = sum_k adj[i,k] @ h[k]; at k==last fuse h_next = act(acc @ W)."""
    k = pl.program_id(1)

    @pl.when(k == 0)
    def _():
        acc_ref[...] = jnp.zeros_like(acc_ref)

    acc_ref[...] += jnp.dot(adj_ref[...], h_ref[...],
                            preferred_element_type=jnp.float32)

    @pl.when(k == pl.num_programs(1) - 1)
    def _():
        hn = jnp.dot(acc_ref[...].astype(jnp.bfloat16), w_ref[...],
                     preferred_element_type=jnp.float32)
        if activate:
            hn = jnp.tanh(hn)
        out_ref[...] = hn.astype(out_ref.dtype)


def adj_q_kernel(adj_ref, h_ref, c_ref, z_ref, q_ref, acc_ref, *, v, n_clusters):
    """Final adj sweep with fused Student-t soft-assignment epilogue."""
    k = pl.program_id(1)

    @pl.when(k == 0)
    def _():
        acc_ref[...] = jnp.zeros_like(acc_ref)

    acc_ref[...] += jnp.dot(adj_ref[...], h_ref[...],
                            preferred_element_type=jnp.float32)

    @pl.when(k == pl.num_programs(1) - 1)
    def _():
        z = acc_ref[...]                                       # [tm, D] f32
        z_ref[...] = z.astype(z_ref.dtype)
        c = c_ref[...]                                         # [Kp, D] f32
        z_sq = jnp.sum(z * z, axis=1, keepdims=True)           # [tm, 1]
        c_sq = jnp.sum(c * c, axis=1, keepdims=True).T         # [1, Kp]
        cross = lax.dot_general(z, c, (((1,), (1,)), ((), ())),
                                preferred_element_type=jnp.float32)
        dist2 = jnp.maximum(z_sq + c_sq - 2.0 * cross, 0.0)    # clamp cancellation
        q = 1.0 / (1.0 + dist2 * (1.0 / v))
        power = (v + 1.0) / 2.0
        if power != 1.0:                                       # skip pow for v == 1
            q = q ** power
        tm, kp = q.shape
        lane_idx = lax.broadcasted_iota(jnp.int32, (tm, kp), 1)
        q = jnp.where(lane_idx < n_clusters, q, 0.0)           # mask padded clusters
        q = q / jnp.sum(q, axis=1, keepdims=True)              # exact reciprocal
        q_ref[...] = q.astype(q_ref.dtype)


# ---------------------------------------------------------------------------
# Wrappers
# ---------------------------------------------------------------------------
def premul(x, w, *, activate, row_tile):
    n_pad, d_in = x.shape
    d_out = w.shape[1]
    return pl.pallas_call(
        functools.partial(premul_kernel, activate=activate),
        out_shape=jax.ShapeDtypeStruct((n_pad, d_out), jnp.bfloat16),
        grid=(n_pad // row_tile,),
        in_specs=[pl.BlockSpec((row_tile, d_in), lambda i: (i, 0)),
                  pl.BlockSpec((d_in, d_out), lambda i: (0, 0))],
        out_specs=pl.BlockSpec((row_tile, d_out), lambda i: (i, 0)),
        compiler_params=pltpu.CompilerParams(
            dimension_semantics=("parallel",),
            vmem_limit_bytes=_vmem_limit_bytes()),
    )(x, w)


def _sweep_common(adj, h, tm, tk, d_acc):
    n_pad = adj.shape[0]
    grid = (n_pad // tm, n_pad // tk)
    adj_spec = pl.BlockSpec((tm, tk), lambda i, k: (i, k))
    h_spec = pl.BlockSpec((tk, h.shape[1]), lambda i, k: (k, 0))  # per-k tile of h
    scratch = [pltpu.VMEM((tm, d_acc), jnp.float32)]
    compiler_params = pltpu.CompilerParams(
        dimension_semantics=("parallel", "arbitrary"),
        vmem_limit_bytes=_vmem_limit_bytes())
    flops = 2 * n_pad * n_pad * h.shape[1]
    bytes_accessed = int(adj.size * adj.dtype.itemsize
                         + (n_pad // tm) * h.size * h.dtype.itemsize
                         + n_pad * d_acc * 4)
    cost = pl.CostEstimate(flops=flops, transcendentals=0,
                           bytes_accessed=bytes_accessed)
    return grid, adj_spec, h_spec, scratch, compiler_params, cost


def adj_sweep_fused(adj, h, w_next, *, tm, tk, activate):
    """h_next = act((adj @ h) @ W_next), bf16 output, no z round trip to HBM."""
    n_pad = adj.shape[0]
    d_in = h.shape[1]
    d_out = w_next.shape[1]
    grid, adj_spec, h_spec, scratch, cp, cost = _sweep_common(adj, h, tm, tk, d_in)
    return pl.pallas_call(
        functools.partial(adj_fused_kernel, activate=activate),
        out_shape=jax.ShapeDtypeStruct((n_pad, d_out), jnp.bfloat16),
        grid=grid,
        in_specs=[adj_spec, h_spec,
                  pl.BlockSpec((d_in, d_out), lambda i, k: (0, 0))],
        out_specs=pl.BlockSpec((tm, d_out), lambda i, k: (i, 0)),
        scratch_shapes=scratch,
        compiler_params=cp,
        cost_estimate=cost,
    )(adj, h, w_next)


def adj_sweep_q(adj, h, clusters, *, tm, tk, v, n_clusters):
    """z = adj @ h (f32) plus fused Student-t soft assignment q (lane-dense)."""
    n_pad = adj.shape[0]
    d = h.shape[1]
    k_pad = clusters.shape[0]
    grid, adj_spec, h_spec, scratch, cp, cost = _sweep_common(adj, h, tm, tk, d)
    return pl.pallas_call(
        functools.partial(adj_q_kernel, v=float(v), n_clusters=int(n_clusters)),
        out_shape=(jax.ShapeDtypeStruct((n_pad, d), jnp.float32),
                   jax.ShapeDtypeStruct((n_pad, k_pad), jnp.float32)),
        grid=grid,
        in_specs=[adj_spec, h_spec,
                  pl.BlockSpec((k_pad, d), lambda i, k: (0, 0))],
        out_specs=(pl.BlockSpec((tm, d), lambda i, k: (i, 0)),
                   pl.BlockSpec((tm, k_pad), lambda i, k: (i, 0))),
        scratch_shapes=scratch,
        compiler_params=cp,
        cost_estimate=cost,
    )(adj, h, clusters)


def multi_attributed_model_forward(pca_feature, topology_adj, params, *, v):
    """Pallas equivalent of MultiAttributedModel_Concatenate.forward -> (z, q)."""
    n, n_input = pca_feature.shape
    e1 = params["w1"].shape[1]
    e2 = params["w2"].shape[1]
    e3 = params["w3"].shape[1]
    n_clusters = params["cluster_layer"].shape[0]

    n_pad, tm, tk = _choose_tiles(n)
    d_in = _round_up(n_input, LANE)
    d1, d2, d3 = (_round_up(e, LANE) for e in (e1, e2, e3))
    k_pad = _round_up(n_clusters, LANE)

    # One-time zero-padding + bf16 cast of the dominant N^2 adjacency stream.
    adj_p = _pad2d(topology_adj, n_pad, n_pad).astype(jnp.bfloat16)
    x_p = _pad2d(pca_feature, n_pad, d_in).astype(jnp.bfloat16)
    w1_p = _pad2d(params["w1"], d_in, d1).astype(jnp.bfloat16)
    w2_p = _pad2d(params["w2"], d1, d2).astype(jnp.bfloat16)
    w3_p = _pad2d(params["w3"], d2, d3).astype(jnp.bfloat16)
    c_p = _pad2d(params["cluster_layer"], k_pad, d3)          # f32, lane-dense K

    h1 = premul(x_p, w1_p, activate=True, row_tile=tm)         # tanh(x @ W1)   bf16
    h2 = adj_sweep_fused(adj_p, h1, w2_p, tm=tm, tk=tk,
                         activate=True)                        # tanh((adj@h1)@W2)
    h3 = adj_sweep_fused(adj_p, h2, w3_p, tm=tm, tk=tk,
                         activate=False)                       # (adj@h2)@W3
    z_p, q_p = adj_sweep_q(adj_p, h3, c_p, tm=tm, tk=tk,
                           v=v, n_clusters=n_clusters)         # z = adj@h3, q

    return z_p[:n, :e3], q_p[:n, :n_clusters]


# ---------------------------------------------------------------------------
# Deterministic parameter init (xavier-uniform, matching torch init shapes)
# ---------------------------------------------------------------------------
def xavier_uniform(key, fan_in, fan_out, shape):
    bound = (6.0 / (fan_in + fan_out)) ** 0.5
    return jax.random.uniform(key, shape, jnp.float32, -bound, bound)


def init_params(key, n_input, e1, e2, e3, n_clusters):
    k1, k2, k3, k4 = jax.random.split(key, 4)
    return {
        "w1": xavier_uniform(k1, n_input, e1, (n_input, e1)),
        "w2": xavier_uniform(k2, e1, e2, (e1, e2)),
        "w3": xavier_uniform(k3, e2, e3, (e2, e3)),
        "cluster_layer": xavier_uniform(k4, n_clusters, e3, (n_clusters, e3)),
    }


def reference_forward(x, adj, params, *, v):
    """Pure-JAX reference using the same bf16-operand / f32-accumulate policy."""
    adj_b = adj.astype(jnp.bfloat16)

    def layer(xx, w, act):
        h = jnp.dot(xx.astype(jnp.bfloat16), w.astype(jnp.bfloat16),
                    preferred_element_type=jnp.float32)
        if act:
            h = jnp.tanh(h)
        return jnp.dot(adj_b, h.astype(jnp.bfloat16),
                       preferred_element_type=jnp.float32)

    z1 = layer(x, params["w1"], True)
    z2 = layer(z1, params["w2"], True)
    z = layer(z2, params["w3"], False)
    c = params["cluster_layer"]
    dist2 = jnp.sum((z[:, None, :] - c[None, :, :]) ** 2, axis=2)
    q = 1.0 / (1.0 + dist2 / v)
    q = q ** ((v + 1.0) / 2.0)
    q = q / jnp.sum(q, axis=1, keepdims=True)
    return z, q


# ---------------------------------------------------------------------------
if __name__ == "__main__":
    # small, module-consistent shapes
    n_nodes = 16
    n_input = 32
    gae_n_enc_1, gae_n_enc_2, gae_n_enc_3 = 32, 16, 16
    n_clusters = 4
    v = 1.0

    key = jax.random.PRNGKey(0)
    kx, kadj, kp = jax.random.split(key, 3)

    pca_feature = jax.random.normal(kx, (n_nodes, n_input), jnp.float32)
    # simple dense symmetric "normalized adjacency"-like matrix
    a = jax.random.uniform(kadj, (n_nodes, n_nodes), jnp.float32)
    topology_adj = (a + a.T) / (2.0 * n_nodes) + jnp.eye(n_nodes, dtype=jnp.float32)

    params = init_params(kp, n_input, gae_n_enc_1, gae_n_enc_2, gae_n_enc_3,
                         n_clusters)

    z, q = multi_attributed_model_forward(pca_feature, topology_adj, params, v=v)
    jax.block_until_ready((z, q))

    # sanity: shapes match torch semantics, q rows sum to 1, matches JAX reference
    assert z.shape == (n_nodes, gae_n_enc_3)
    assert q.shape == (n_nodes, n_clusters)
    assert bool(jnp.allclose(jnp.sum(q, axis=1), 1.0, atol=1e-3))

    z_ref, q_ref = reference_forward(pca_feature, topology_adj, params, v=v)
    assert bool(jnp.allclose(z, z_ref, rtol=3e-2, atol=3e-2))
    assert bool(jnp.allclose(q, q_ref, rtol=3e-2, atol=3e-2))

    print("KERNEL_OK")
</pallas_src>

<mosaic_0001>
module attributes {stable_mosaic.version = 11 : i64} {
  func.func @premul_kernel(%arg0: i32, %arg1: memref<128x128xbf16, #tpu.memory_space<vmem>>, %arg2: memref<128x128xbf16, #tpu.memory_space<vmem>>, %arg3: memref<128x128xbf16, #tpu.memory_space<vmem>>) attributes {dimension_semantics = [#tpu.dimension_semantics<parallel>], iteration_bounds = array<i64: 1>, scalar_prefetch = 0 : i64, scratch_operands = 0 : i64, tpu.core_type = #tpu.core_type<tc>, window_params = [{transform_indices = @transform_0, window_bounds = array<i64: 128, 128>}, {pipeline_mode = #tpu.pipeline_mode<synchronous>, transform_indices = @transform_1, window_bounds = array<i64: 128, 128>}, {transform_indices = @transform_2, window_bounds = array<i64: 128, 128>}]} {
    %c0 = arith.constant 0 : index
    %c0_0 = arith.constant 0 : index
    %0 = vector.load %arg1[%c0, %c0_0] : memref<128x128xbf16, #tpu.memory_space<vmem>>, vector<128x128xbf16>
    %c0_1 = arith.constant 0 : index
    %c0_2 = arith.constant 0 : index
    %1 = vector.load %arg2[%c0_1, %c0_2] : memref<128x128xbf16, #tpu.memory_space<vmem>>, vector<128x128xbf16>
    %cst = arith.constant dense<0.000000e+00> : vector<128x128xf32>
    %2 = tpu.matmul %0, %1, %cst {dimension_numbers = #tpu.dot_dimension_numbers<[1], [0], [0], [1], [0, 0, 1, 1], [], []>} : vector<128x128xbf16>, vector<128x128xbf16>, vector<128x128xf32> -> vector<128x128xf32>
    %3 = math.tanh %2 : vector<128x128xf32>
    %4 = arith.truncf %3 : vector<128x128xf32> to vector<128x128xbf16>
    %c0_3 = arith.constant 0 : index
    %c0_4 = arith.constant 0 : index
    %5 = vector.load %arg3[%c0_3, %c0_4] : memref<128x128xbf16, #tpu.memory_space<vmem>>, vector<128x128xbf16>
    tpu.vector_store %arg3[%c0_3, %c0_4], %4 {strides = array<i32>} : memref<128x128xbf16, #tpu.memory_space<vmem>>, vector<128x128xbf16>,
    return
  }
  func.func @transform_0(%arg0: i32) -> (i32, i32) {
    %c0_i32 = arith.constant 0 : i32
    %c0_i32_0 = arith.constant 0 : i32
    return %arg0, %c0_i32 : i32, i32
  }
  func.func @transform_1(%arg0: i32) -> (i32, i32) {
    %c0_i32 = arith.constant 0 : i32
    %c0_i32_0 = arith.constant 0 : i32
    %c0_i32_1 = arith.constant 0 : i32
    return %c0_i32, %c0_i32_0 : i32, i32
  }
  func.func @transform_2(%arg0: i32) -> (i32, i32) {
    %c0_i32 = arith.constant 0 : i32
    %c0_i32_0 = arith.constant 0 : i32
    return %arg0, %c0_i32 : i32, i32
  }
}

</mosaic_0001>

<bundles_post_ra>
// kernel: tpu_custom_call.1
= control target key start
LH: loop header
LB: loop body
LE: loop exit
PB: predicated region body
PF: predicated region fallthrough
CT: control target
= control target key end

     0   :  { %7 = vsyncpa [#allocation3], 0  ;;  %s729_s0 = inlined_call_operand.hbm [shape: bf16[128,128], index: 0, kind: input, shape index: {}]   ;;  %s730_s1 = inlined_call_operand.hbm [shape: bf16[128,128], index: 1, kind: input, shape index: {}]   ;;  %s731_s2 = inlined_call_operand.hbm [shape: bf16[128,128], index: 2, kind: output, shape index: {}]  }
   0x1   :  { %8 = vsyncpa [#allocation6], 0 }
   0x2   :  { %9 = vsyncpa [#allocation4], 0  ;;  %s664_s9 = smov [#allocation2]   ;;  %s592_s13 = scalar_lea.hbm %s729_s0, 1024 }
   0x3   :  { %s15_s10 = sshll.u32 %s664_s9, 4  ;;  %p593_p0 = scmp.ne.s32.totalorder %s729_s0, %s592_s13  ;;  %s16_s10 = int_to_ptr.vmem [resolvable:$true] %s15_s10 }
   0x4   :  { %p596_p1 = scmp.lt.u32.totalorder %s592_s13, %s729_s0 }
   0x6   :  { %p598_p2 = pnand %p596_p1, %p593_p0 }
   0x8   :  { %601 = shalt.err (!%p598_p2)
}
   0x9   :  { %s602_s18 = scalar_lea.vmem %s16_s10, 1024  ;;  %p607_p4 = scmp.lt.s32.totalorder %s16_s10, %s16_s10 }
   0xa   :  { %p603_p3 = scmp.ne.s32.totalorder %s16_s10, %s602_s18  ;;  %p608_p5 = scmp.lt.s32.totalorder %s602_s18, %s602_s18 }
   0xc   :  { %p609_p6 = por %p608_p5, %p607_p4 }
   0xe   :  { %p610_p7 = pnand %p609_p6, %p603_p3 }
  0x10   :  { %613 = shalt.err (!%p610_p7)
}
  0x11   :  { %s665_s19 = smov 64   ;;  %s666_s20 = smov 4  }
  0x12   :  { %21 = dma.hbm_to_vmem [thread:$0]  %s729_s0, 1024, %s16_s10, [#allocation3], %s665_s19, %s665_s19, %s666_s20  }
  0x13   :  { %s667_s23 = smov [#allocation5]   ;;  %s614_s27 = scalar_lea.hbm %s730_s1, 1024 }
  0x14   :  { %s27_s24 = sshll.u32 %s667_s23, 4  ;;  %p615_p8 = scmp.ne.s32.totalorder %s730_s1, %s614_s27  ;;  %s28_s24 = int_to_ptr.vmem [resolvable:$true] %s27_s24 }
  0x15   :  { %p618_p9 = scmp.lt.u32.totalorder %s614_s27, %s730_s1 }
  0x17   :  { %p620_p10 = pnand %p618_p9, %p615_p8 }
  0x19   :  { %623 = shalt.err (!%p620_p10)
}
  0x1a   :  { %s624_s4 = scalar_lea.vmem %s28_s24, 1024  ;;  %p629_p12 = scmp.lt.s32.totalorder %s28_s24, %s28_s24 }
  0x1b   :  { %p625_p11 = scmp.ne.s32.totalorder %s28_s24, %s624_s4  ;;  %p630_p13 = scmp.lt.s32.totalorder %s624_s4, %s624_s4 }
  0x1d   :  { %p631_p0 = por %p630_p13, %p629_p12 }
  0x1f   :  { %p632_p1 = pnand %p631_p0, %p625_p11 }
  0x21   :  { %635 = shalt.err (!%p632_p1)
}
  0x22   :  { %33 = dma.hbm_to_vmem [thread:$0]  %s730_s1, 1024, %s28_s24, [#allocation6], %s665_s19, %s665_s19, %s666_s20  }
  0x23   :  { %658 = dma.done.wait [#allocation3], 1024  }
  0x24   :  { %659 = vsyncadd [#allocation3], 4294966272 }
  0x25   :  { %660 = dma.done.wait [#allocation6], 1024  }
  0x26   :  { %661 = vsyncadd [#allocation6], 4294966272  ;;  %v544_v0 = vld [vmem:[#allocation5] sm:$0xff]   ;;  %v545_v1 = vld [vmem:[#allocation5 + $0x8] sm:$0xff]   ;;  %s668_s1 = smov [#allocation7]  }
  0x27   :  { %491 = vmatprep.subr.bf16.mxu0 %v544_v0  ;;  %523 = vmatprep.subr.bf16.mxu1 %v544_v0  ;;  %v546_v2 = vld [vmem:[#allocation5 + $0x10] sm:$0xff]   ;;  %v547_v3 = vld [vmem:[#allocation5 + $0x18] sm:$0xff]   ;;  %v552_v4 = vld [vmem:[#allocation2] sm:$0xff]   ;;  %s367_s6 = sshll.u32 %s668_s1, 4  ;;  %s368_s6 = int_to_ptr.vmem [resolvable:$true] %s367_s6 }
  0x28   :  { %492 = vmatpush3.bf16.msra.mxu0 %v544_v0  ;;  %531 = vmatpush3.bf16.msra.mxu1 %v544_v0  ;;  %v553_v5 = vld [vmem:[#allocation2 + $0x20] sm:$0xff]   ;;  %v549_v7 = vld [vmem:[#allocation5 + $0x28] sm:$0xff]   ;;  %v550_v8 = vld [vmem:[#allocation5 + $0x30] sm:$0xff]   ;;  %s636_s7 = scalar_lea.vmem %s368_s6, 1024  ;;  %p641_p3 = scmp.lt.s32.totalorder %s368_s6, %s368_s6 }
  0x29   :  { %493 = vmatprep.subr.bf16.mxu0 %v545_v1  ;;  %524 = vmatprep.subr.bf16.mxu1 %v545_v1  ;;  %v548_v6 = vld [vmem:[#allocation5 + $0x20] sm:$0xff]   ;;  %v551_v9 = vld [vmem:[#allocation5 + $0x38] sm:$0xff]   ;;  %v554_v10 = vld [vmem:[#allocation2 + $0x8] sm:$0xff]   ;;  %p637_p2 = scmp.ne.s32.totalorder %s368_s6, %s636_s7  ;;  %p642_p4 = scmp.lt.s32.totalorder %s636_s7, %s636_s7 }
  0x2a   :  { %507 = vmatprep.mubr.bf16.mxu0 %v552_v4  ;;  %515 = vmatprep.mubr.bf16.mxu1 %v553_v5  ;;  %v555_v11 = vld [vmem:[#allocation2 + $0x28] sm:$0xff]   ;;  %v556_v12 = vld [vmem:[#allocation2 + $0x10] sm:$0xff]   ;;  %v558_v14 = vld [vmem:[#allocation2 + $0x18] sm:$0xff]  }
  0x2b   :  { %v557_v13 = vld [vmem:[#allocation2 + $0x30] sm:$0xff]   ;;  %v559_v15 = vld [vmem:[#allocation2 + $0x38] sm:$0xff]   ;;  %p643_p5 = por %p642_p4, %p641_p3 }
  0x2c   :  { %494 = vmatpush3.bf16.msra.mxu0 %v545_v1  ;;  %532 = vmatpush3.bf16.msra.mxu1 %v545_v1 }
  0x2d   :  { %495 = vmatprep.subr.bf16.mxu0 %v546_v2  ;;  %525 = vmatprep.subr.bf16.mxu1 %v546_v2  ;;  %p644_p6 = pnand %p643_p5, %p637_p2 }
  0x30   :  { %496 = vmatpush3.bf16.msra.mxu0 %v546_v2  ;;  %533 = vmatpush3.bf16.msra.mxu1 %v546_v2 }
  0x31   :  { %497 = vmatprep.subr.bf16.mxu0 %v547_v3  ;;  %526 = vmatprep.subr.bf16.mxu1 %v547_v3 }
  0x34   :  { %498 = vmatpush3.bf16.msra.mxu0 %v547_v3  ;;  %534 = vmatpush3.bf16.msra.mxu1 %v547_v3 }
  0x35   :  { %499 = vmatprep.subr.bf16.mxu0 %v548_v6  ;;  %527 = vmatprep.subr.bf16.mxu1 %v548_v6 }
  0x38   :  { %500 = vmatpush3.bf16.msra.mxu0 %v548_v6  ;;  %535 = vmatpush3.bf16.msra.mxu1 %v548_v6 }
  0x39   :  { %501 = vmatprep.subr.bf16.mxu0 %v549_v7  ;;  %528 = vmatprep.subr.bf16.mxu1 %v549_v7 }
  0x3c   :  { %502 = vmatpush3.bf16.msra.mxu0 %v549_v7  ;;  %536 = vmatpush3.bf16.msra.mxu1 %v549_v7 }
  0x3d   :  { %503 = vmatprep.subr.bf16.mxu0 %v550_v8  ;;  %529 = vmatprep.subr.bf16.mxu1 %v550_v8 }
  0x40   :  { %504 = vmatpush3.bf16.msra.mxu0 %v550_v8  ;;  %537 = vmatpush3.bf16.msra.mxu1 %v550_v8 }
  0x41   :  { %505 = vmatprep.subr.bf16.mxu0 %v551_v9  ;;  %530 = vmatprep.subr.bf16.mxu1 %v551_v9 }
  0x44   :  { %506 = vmatpush3.bf16.msra.mxu0 %v551_v9  ;;  %538 = vmatpush3.bf16.msra.mxu1 %v551_v9 }
  0x47   :  { %508 = vmatmul.mubr.bf16.vlgmr.msra.gmra.mrb[0].mxu0 %v554_v10  ;;  %516 = vmatmul.mubr.bf16.vlgmr.msra.gmra.mrb[0].mxu1 %v555_v11 }
  0x48   :  { %511 = vmatprep.mubr.bf16.mxu0 %v556_v12  ;;  %519 = vmatprep.mubr.bf16.mxu1 %v557_v13 }
  0x4f   :  { %512 = vmatmul.mubr.bf16.gmra.mrb[4].mxu0 %v558_v14  ;;  %520 = vmatmul.mubr.bf16.gmra.mrb[4].mxu1 %v559_v15 }
 0x11a   :  { %v509_v16 = vpop.f32.mrb[0].mxu0  ;;  %v517_v17 = vpop.f32.mrb[0].mxu1 }
 0x11b   :  { %560 = vtanh.f32 %v509_v16  ;;  %v203_v18 = vpop.f32.mrb[1].mxu0  ;;  %v235_v19 = vpop.f32.mrb[1].mxu1 }
 0x11c   :  { %562 = vtanh.f32 %v517_v17  ;;  %v510_v20 = vpop.f32.mrb[2].mxu0  ;;  %v518_v21 = vpop.f32.mrb[2].mxu1 }
 0x11d   :  { %564 = vtanh.f32 %v203_v18  ;;  %v206_v22 = vpop.f32.mrb[3].mxu0  ;;  %v238_v23 = vpop.f32.mrb[3].mxu1 }
 0x11e   :  { %566 = vtanh.f32 %v235_v19 }
 0x11f   :  { %568 = vtanh.f32 %v510_v20 }
 0x120   :  { %570 = vtanh.f32 %v518_v21 }
 0x121   :  { %572 = vtanh.f32 %v206_v22 }
 0x122   :  { %574 = vtanh.f32 %v238_v23  ;;  %v513_v24 = vpop.f32.mrb[4].mxu0  ;;  %v521_v25 = vpop.f32.mrb[4].mxu1 }
 0x123   :  { %576 = vtanh.f32 %v513_v24  ;;  %v219_v26 = vpop.f32.mrb[5].mxu0  ;;  %v251_v27 = vpop.f32.mrb[5].mxu1 }
 0x124   :  { %578 = vtanh.f32 %v521_v25  ;;  %v514_v28 = vpop.f32.mrb[6].mxu0  ;;  %v522_v29 = vpop.f32.mrb[6].mxu1 }
 0x125   :  { %v561_v30 = vpop.eup %560  ;;  %580 = vtanh.f32 %v219_v26  ;;  %v222_v31 = vpop.f32.mrb[7].mxu0 }
 0x126   :  { %v254_v32 = vpop.f32.mrb[7].mxu1  ;;  %v563_v33 = vpop.eup %562  ;;  %582 = vtanh.f32 %v251_v27 }
 0x127   :  { %v565_v34 = vpop.eup %564  ;;  %584 = vtanh.f32 %v514_v28 }
 0x128   :  { %v567_v35 = vpop.eup %566  ;;  %586 = vtanh.f32 %v522_v29 }
 0x129   :  { %v569_v36 = vpop.eup %568  ;;  %588 = vtanh.f32 %v222_v31 }
 0x12a   :  { %v571_v37 = vpop.eup %570  ;;  %v436_v38 = vpack.c.bf16 %v569_v36, %v561_v30  ;;  %590 = vtanh.f32 %v254_v32 }
 0x12b   :  { %v573_v39 = vpop.eup %572  ;;  %v456_v40 = vpack.c.bf16 %v571_v37, %v563_v33 }
 0x12c   :  { %v575_v41 = vpop.eup %574  ;;  %468 = vst [vmem:[#allocation7 + $0x8] sm:$0xff] %v436_v38   ;;  %v431_v42 = vpack.c.bf16 %v573_v39, %v565_v34 }
 0x12d   :  { %v577_v43 = vpop.eup %576  ;;  %472 = vst [vmem:[#allocation7 + $0x28] sm:$0xff] %v456_v40   ;;  %v451_v44 = vpack.c.bf16 %v575_v41, %v567_v35 }
 0x12e   :  { %v579_v45 = vpop.eup %578  ;;  %432 = vst [vmem:[#allocation7] sm:$0xff] %v431_v42  }
 0x12f   :  { %v581_v46 = vpop.eup %580  ;;  %471 = vst [vmem:[#allocation7 + $0x20] sm:$0xff] %v451_v44  }
 0x130   :  { %v583_v47 = vpop.eup %582 }
 0x131   :  { %v585_v48 = vpop.eup %584 }
 0x132   :  { %v587_v49 = vpop.eup %586  ;;  %v446_v50 = vpack.c.bf16 %v585_v48, %v577_v43 }
 0x133   :  { %v589_v51 = vpop.eup %588  ;;  %v466_v52 = vpack.c.bf16 %v587_v49, %v579_v45 }
 0x134   :  { %v591_v53 = vpop.eup %590  ;;  %470 = vst [vmem:[#allocation7 + $0x18] sm:$0xff] %v446_v50   ;;  %v441_v54 = vpack.c.bf16 %v589_v51, %v581_v46 }
 0x135   :  { %474 = vst [vmem:[#allocation7 + $0x38] sm:$0xff] %v466_v52   ;;  %v461_v55 = vpack.c.bf16 %v591_v53, %v583_v47 }
 0x136   :  { %469 = vst [vmem:[#allocation7 + $0x10] sm:$0xff] %v441_v54  }
 0x137   :  { %473 = vst [vmem:[#allocation7 + $0x30] sm:$0xff] %v461_v55  }
 0x138   :  { %647 = shalt.err (!%p644_p6)
}
 0x139   :  { %s648_s10 = scalar_lea.hbm %s731_s2, 1024 }
 0x13a   :  { %p649_p7 = scmp.ne.s32.totalorder %s731_s2, %s648_s10  ;;  %p652_p8 = scmp.lt.u32.totalorder %s648_s10, %s731_s2 }
 0x13c   :  { %p654_p9 = pnand %p652_p8, %p649_p7 }
 0x13e   :  { %657 = shalt.err (!%p654_p9)
}
 0x13f   :  { %373 = dma.vmem_to_hbm [thread:$0]  %s368_s6, 1024, %s731_s2, [#allocation4], %s665_s19, %s665_s19, %s666_s20  }
 0x140   :  { %662 = dma.done.wait [#allocation4], 1024  }
 0x141   :  { %663 = vsyncadd [#allocation4], 4294966272 }
 0x142   :  { %377 = vsyncpa [#allocation3], 1 }
 0x143   :  { %378 = vsyncpa [#allocation6], 1 }
 0x144   :  { %379 = vsyncpa [#allocation4], 1 }

</bundles_post_ra>
